<compile_context>
chip_gen: v6e
topology: v6e:2x2x1
jax: 0.10.0
libtpu: 0.0.40
codegen_flags: <defaults>
</compile_context>

<pallas_src>
import functools

import jax
import jax.numpy as jnp
from jax.experimental import pallas as pl
from jax.experimental.pallas import tpu as pltpu


def _round_up(x, m):
    return ((x + m - 1) // m) * m


def _choose_tile_b(batch, tile_b):
    # Multiple of 16 sublanes (bf16 packing); at least one full tile.
    tb = min(int(tile_b), _round_up(batch, 16))
    tb = max(16, _round_up(tb, 16))
    # v7x megacore: keep >= 2 grid steps on the "parallel" batch axis when the
    # batch is large enough to split, so the second TensorCore isn't idle.
    if batch > 16:
        tb = min(tb, max(16, _round_up(-(-batch // 2), 16)))
    return tb


def _actor_kernel(action_dim, log_std_min, log_std_max,
                  obs_ref, w0_ref, b0_ref, w1_ref, b1_ref, w2_ref, b2_ref,
                  out_ref):
    # obs arrives f32 from HBM; cast to bf16 on the VPU (hidden under MXU).
    x = obs_ref[...].astype(jnp.bfloat16)

    # Layer 0: Linear (bf16 operands, f32 accumulate on MXU) + bias + ReLU.
    h = jnp.dot(x, w0_ref[...], preferred_element_type=jnp.float32)
    h = jnp.maximum(h + b0_ref[...], 0.0).astype(jnp.bfloat16)

    # Layer 1: Linear + bias + ReLU.
    h = jnp.dot(h, w1_ref[...], preferred_element_type=jnp.float32)
    h = jnp.maximum(h + b1_ref[...], 0.0).astype(jnp.bfloat16)

    # Output layer: lane-padded (TILE_B, out_p) = [mu || log_std || zeros].
    out = jnp.dot(h, w2_ref[...], preferred_element_type=jnp.float32)
    out = out + b2_ref[...]

    # chunk(2, dim=-1) without a lane slice: lane-iota mask keyed on the real
    # action_dim selects the log_std lanes.  tanh/exp over the mu / padded
    # lanes is wasted EUP work on a few lanes but avoids any cross-lane
    # relayout; tanh saturates, so the exp argument is always bounded.
    lane = jax.lax.broadcasted_iota(jnp.int32, out.shape, dimension=1)
    is_std = jnp.logical_and(lane >= action_dim, lane < 2 * action_dim)
    ls = jnp.tanh(out)
    ls = log_std_min + 0.5 * (log_std_max - log_std_min) * (ls + 1.0)
    std = jnp.exp(ls)

    out_ref[...] = jnp.where(is_std, std, out).astype(out_ref.dtype)


def prepare_actor_params(params):
    """One-time prep: cast weights to bf16 and zero-pad to TPU-friendly dims.

    Call this when the weights change (per optimizer step), NOT per forward:
    it removes the per-call f32->bf16 cast passes over the weights and makes
    the kernel's output lanes and obs K dimension dense.
    """
    w0, b0, w1, b1, w2, b2 = params
    obs_dim, hidden = w0.shape
    two_a = w2.shape[1]
    obs_dim_p = _round_up(obs_dim, 128)
    out_p = _round_up(two_a, 128)

    w0p = jnp.zeros((obs_dim_p, hidden), jnp.bfloat16)
    w0p = w0p.at[:obs_dim, :].set(w0.astype(jnp.bfloat16))
    w2p = jnp.zeros((hidden, out_p), jnp.bfloat16)
    w2p = w2p.at[:, :two_a].set(w2.astype(jnp.bfloat16))
    b2p = jnp.zeros((1, out_p), jnp.float32)
    b2p = b2p.at[:, :two_a].set(b2.astype(jnp.float32))

    prepared = (w0p, b0.astype(jnp.float32), w1.astype(jnp.bfloat16),
                b1.astype(jnp.float32), w2p, b2p)
    meta = dict(obs_dim=obs_dim, obs_dim_p=obs_dim_p, hidden=hidden,
                two_a=two_a, out_p=out_p)
    return prepared, meta


def diag_gaussian_actor_forward(obs, prepared_params, meta, action_dim,
                                log_std_bounds, tile_b=512):
    """Returns (mu, std) — the parameters of the diagonal Normal distribution."""
    w0, b0, w1, b1, w2, b2 = prepared_params
    batch, obs_dim = obs.shape
    obs_dim_p = meta["obs_dim_p"]
    hidden = meta["hidden"]
    two_a = meta["two_a"]
    out_p = meta["out_p"]
    assert two_a == 2 * action_dim
    log_std_min, log_std_max = (float(v) for v in log_std_bounds)

    # Only pad obs columns when obs_dim is ragged w.r.t. 128 (matches the
    # pre-padded w0 rows); otherwise obs is passed through untouched in f32.
    if obs_dim_p != obs_dim:
        obs = jnp.pad(obs, ((0, 0), (0, obs_dim_p - obs_dim)))

    tb = _choose_tile_b(batch, tile_b)
    grid = (pl.cdiv(batch, tb),)

    kernel = functools.partial(
        _actor_kernel, action_dim, log_std_min, log_std_max)

    # Weights/biases: full-array blocks, constant index_map -> VMEM resident,
    # DMA'd once across the whole grid.
    resident = lambda a: pl.BlockSpec(a.shape, lambda i: (0,) * a.ndim)
    # TODO(synk): on v7x, single-buffering the resident weight BlockSpecs
    # (pipeline_mode=pl.Buffered(1)) frees VMEM for very large hidden dims.

    flops = 2 * batch * (obs_dim_p * hidden + hidden * hidden + hidden * out_p)
    transcendentals = 2 * batch * out_p  # tanh + exp over packed lanes
    bytes_accessed = (obs.size * 4
                      + (w0.size + w1.size + w2.size) * 2
                      + (b0.size + b1.size + b2.size) * 4
                      + batch * out_p * 4)

    # Explicit VMEM budget: resident weights/biases (double-buffered by the
    # pipeliner), double-buffered obs/output tiles, plus intermediates; keep
    # headroom but stay well below v7x's 64 MiB physical VMEM.
    vmem_est = (2 * 2 * (w0.size + w1.size + w2.size)
                + 2 * 4 * (b0.size + b1.size + b2.size)
                + 2 * 4 * tb * (obs_dim_p + out_p)
                + 6 * 4 * tb * max(hidden, out_p))
    vmem_limit = int(min(max(int(vmem_est * 1.5), 32 * 1024 * 1024),
                         56 * 1024 * 1024))

    packed = pl.pallas_call(
        kernel,
        out_shape=jax.ShapeDtypeStruct((batch, out_p), jnp.float32),
        grid=grid,
        in_specs=[
            pl.BlockSpec((tb, obs_dim_p), lambda i: (i, 0)),
            resident(w0), resident(b0),
            resident(w1), resident(b1),
            resident(w2), resident(b2),
        ],
        out_specs=pl.BlockSpec((tb, out_p), lambda i: (i, 0)),
        compiler_params=pltpu.CompilerParams(
            dimension_semantics=("parallel",),
            vmem_limit_bytes=vmem_limit),
        cost_estimate=pl.CostEstimate(
            flops=flops,
            transcendentals=transcendentals,
            bytes_accessed=bytes_accessed),
    )(obs, w0, b0, w1, b1, w2, b2)

    mu = packed[:, :action_dim]
    std = packed[:, action_dim:two_a]
    return mu, std


def init_params(key, obs_dim, action_dim, hidden_dim):
    """Deterministic synthetic init (stands in for util.weight_init).

    Note: for best MXU utilization pick hidden_dim as a multiple of 128 (256
    on v6e/v7x) in real training configs; the kernel is correct for any size.
    """
    ks = jax.random.split(key, 3)
    scale0 = 1.0 / jnp.sqrt(obs_dim)
    scaleh = 1.0 / jnp.sqrt(hidden_dim)
    w0 = jax.random.normal(ks[0], (obs_dim, hidden_dim), jnp.float32) * scale0
    b0 = jnp.zeros((1, hidden_dim), jnp.float32)
    w1 = jax.random.normal(ks[1], (hidden_dim, hidden_dim), jnp.float32) * scaleh
    b1 = jnp.zeros((1, hidden_dim), jnp.float32)
    w2 = jax.random.normal(ks[2], (hidden_dim, 2 * action_dim), jnp.float32) * scaleh
    b2 = jnp.zeros((1, 2 * action_dim), jnp.float32)
    return (w0, b0, w1, b1, w2, b2)


def _reference(obs, params, action_dim, log_std_bounds):
    """Pure-JAX reference with the same bf16-operand / f32-accumulate recipe."""
    w0, b0, w1, b1, w2, b2 = params
    bf = jnp.bfloat16
    h = jnp.dot(obs.astype(bf), w0.astype(bf), preferred_element_type=jnp.float32)
    h = jnp.maximum(h + b0, 0.0).astype(bf)
    h = jnp.dot(h, w1.astype(bf), preferred_element_type=jnp.float32)
    h = jnp.maximum(h + b1, 0.0).astype(bf)
    out = jnp.dot(h, w2.astype(bf), preferred_element_type=jnp.float32) + b2
    mu, ls = out[:, :action_dim], out[:, action_dim:]
    ls = jnp.tanh(ls)
    lo, hi = log_std_bounds
    ls = lo + 0.5 * (hi - lo) * (ls + 1.0)
    return mu, jnp.exp(ls)


if __name__ == "__main__":
    # Small, forward-consistent shapes.  batch=20 exercises the tiled batch
    # grid (2 steps, ragged last block) and the lane-padded (8 -> 128) output.
    batch = 20
    obs_dim = 32
    hidden_dim = 32
    action_dim = 4
    log_std_bounds = (-10.0, 2.0)   # typical SAC setting

    key = jax.random.PRNGKey(0)
    k_obs, k_par = jax.random.split(key)
    obs = jax.random.normal(k_obs, (batch, obs_dim), jnp.float32)
    params = init_params(k_par, obs_dim, action_dim, hidden_dim)

    # One-time weight prep (bf16 cast + lane padding); reused across forwards.
    prepared, meta = prepare_actor_params(params)

    mu, std = diag_gaussian_actor_forward(
        obs, prepared, meta, action_dim, log_std_bounds)
    jax.block_until_ready((mu, std))

    mu_ref, std_ref = _reference(obs, params, action_dim, log_std_bounds)

    assert mu.shape == (batch, action_dim) and std.shape == (batch, action_dim)
    assert jnp.all(std > 0.0)
    assert jnp.allclose(mu, mu_ref, atol=1e-3, rtol=1e-3)
    assert jnp.allclose(std, std_ref, atol=1e-3, rtol=1e-3)

    # TODO(synk): dist.rsample() (select_action) needs a PRNG draw; it is a
    # trivial mu + std * eps outside the hot path and is left in plain JAX.
    print("KERNEL_OK")
</pallas_src>

<mosaic_0001>
module attributes {stable_mosaic.version = 11 : i64} {
  func.func @_actor_kernel(%arg0: i32, %arg1: memref<16x128xf32, #tpu.memory_space<vmem>>, %arg2: memref<128x32xbf16, #tpu.memory_space<vmem>>, %arg3: memref<1x32xf32, #tpu.memory_space<vmem>>, %arg4: memref<32x32xbf16, #tpu.memory_space<vmem>>, %arg5: memref<1x32xf32, #tpu.memory_space<vmem>>, %arg6: memref<32x128xbf16, #tpu.memory_space<vmem>>, %arg7: memref<1x128xf32, #tpu.memory_space<vmem>>, %arg8: memref<16x128xf32, #tpu.memory_space<vmem>>) attributes {dimension_semantics = [#tpu.dimension_semantics<parallel>], iteration_bounds = array<i64: 2>, scalar_prefetch = 0 : i64, scratch_operands = 0 : i64, tpu.core_type = #tpu.core_type<tc>, window_params = [{transform_indices = @transform_0, window_bounds = array<i64: 16, 128>}, {pipeline_mode = #tpu.pipeline_mode<synchronous>, transform_indices = @transform_1, window_bounds = array<i64: 128, 32>}, {pipeline_mode = #tpu.pipeline_mode<synchronous>, transform_indices = @transform_2, window_bounds = array<i64: 1, 32>}, {pipeline_mode = #tpu.pipeline_mode<synchronous>, transform_indices = @transform_3, window_bounds = array<i64: 32, 32>}, {pipeline_mode = #tpu.pipeline_mode<synchronous>, transform_indices = @transform_4, window_bounds = array<i64: 1, 32>}, {pipeline_mode = #tpu.pipeline_mode<synchronous>, transform_indices = @transform_5, window_bounds = array<i64: 32, 128>}, {pipeline_mode = #tpu.pipeline_mode<synchronous>, transform_indices = @transform_6, window_bounds = array<i64: 1, 128>}, {transform_indices = @transform_7, window_bounds = array<i64: 16, 128>}]} {
    %c0 = arith.constant 0 : index
    %c0_0 = arith.constant 0 : index
    %0 = vector.load %arg1[%c0, %c0_0] : memref<16x128xf32, #tpu.memory_space<vmem>>, vector<16x128xf32>
    %1 = arith.truncf %0 : vector<16x128xf32> to vector<16x128xbf16>
    %c0_1 = arith.constant 0 : index
    %c0_2 = arith.constant 0 : index
    %2 = vector.load %arg2[%c0_1, %c0_2] : memref<128x32xbf16, #tpu.memory_space<vmem>>, vector<128x32xbf16>
    %cst = arith.constant dense<0.000000e+00> : vector<16x32xf32>
    %3 = tpu.matmul %1, %2, %cst {dimension_numbers = #tpu.dot_dimension_numbers<[1], [0], [0], [1], [0, 0, 1, 1], [], []>} : vector<16x128xbf16>, vector<128x32xbf16>, vector<16x32xf32> -> vector<16x32xf32>
    %c0_3 = arith.constant 0 : index
    %c0_4 = arith.constant 0 : index
    %4 = vector.load %arg3[%c0_3, %c0_4] : memref<1x32xf32, #tpu.memory_space<vmem>>, vector<1x32xf32>
    %5 = vector.broadcast %4 : vector<1x32xf32> to vector<16x32xf32>
    %6 = arith.addf %3, %5 : vector<16x32xf32>
    %cst_5 = arith.constant 0.000000e+00 : f32
    %7 = vector.broadcast %cst_5 : f32 to vector<16x32xf32>
    %8 = arith.maximumf %6, %7 : vector<16x32xf32>
    %9 = arith.truncf %8 : vector<16x32xf32> to vector<16x32xbf16>
    %c0_6 = arith.constant 0 : index
    %c0_7 = arith.constant 0 : index
    %10 = vector.load %arg4[%c0_6, %c0_7] : memref<32x32xbf16, #tpu.memory_space<vmem>>, vector<32x32xbf16>
    %cst_8 = arith.constant dense<0.000000e+00> : vector<16x32xf32>
    %11 = tpu.matmul %9, %10, %cst_8 {dimension_numbers = #tpu.dot_dimension_numbers<[1], [0], [0], [1], [0, 0, 1, 1], [], []>} : vector<16x32xbf16>, vector<32x32xbf16>, vector<16x32xf32> -> vector<16x32xf32>
    %c0_9 = arith.constant 0 : index
    %c0_10 = arith.constant 0 : index
    %12 = vector.load %arg5[%c0_9, %c0_10] : memref<1x32xf32, #tpu.memory_space<vmem>>, vector<1x32xf32>
    %13 = vector.broadcast %12 : vector<1x32xf32> to vector<16x32xf32>
    %14 = arith.addf %11, %13 : vector<16x32xf32>
    %cst_11 = arith.constant 0.000000e+00 : f32
    %15 = vector.broadcast %cst_11 : f32 to vector<16x32xf32>
    %16 = arith.maximumf %14, %15 : vector<16x32xf32>
    %17 = arith.truncf %16 : vector<16x32xf32> to vector<16x32xbf16>
    %c0_12 = arith.constant 0 : index
    %c0_13 = arith.constant 0 : index
    %18 = vector.load %arg6[%c0_12, %c0_13] : memref<32x128xbf16, #tpu.memory_space<vmem>>, vector<32x128xbf16>
    %cst_14 = arith.constant dense<0.000000e+00> : vector<16x128xf32>
    %19 = tpu.matmul %17, %18, %cst_14 {dimension_numbers = #tpu.dot_dimension_numbers<[1], [0], [0], [1], [0, 0, 1, 1], [], []>} : vector<16x32xbf16>, vector<32x128xbf16>, vector<16x128xf32> -> vector<16x128xf32>
    %c0_15 = arith.constant 0 : index
    %c0_16 = arith.constant 0 : index
    %20 = vector.load %arg7[%c0_15, %c0_16] : memref<1x128xf32, #tpu.memory_space<vmem>>, vector<1x128xf32>
    %21 = vector.broadcast %20 : vector<1x128xf32> to vector<16x128xf32>
    %22 = arith.addf %19, %21 : vector<16x128xf32>
    %23 = tpu.iota {dimensions = array<i32: 1>} : vector<16x128xi32>
    %c4_i32 = arith.constant 4 : i32
    %24 = vector.broadcast %c4_i32 : i32 to vector<16x128xi32>
    %25 = arith.cmpi sge, %23, %24 : vector<16x128xi32>
    %c8_i32 = arith.constant 8 : i32
    %26 = vector.broadcast %c8_i32 : i32 to vector<16x128xi32>
    %27 = arith.cmpi slt, %23, %26 : vector<16x128xi32>
    %28 = arith.andi %25, %27 : vector<16x128xi1>
    %29 = math.tanh %22 : vector<16x128xf32>
    %cst_17 = arith.constant 1.000000e+00 : f32
    %30 = vector.broadcast %cst_17 : f32 to vector<16x128xf32>
    %31 = arith.addf %29, %30 : vector<16x128xf32>
    %cst_18 = arith.constant 6.000000e+00 : f32
    %32 = vector.broadcast %cst_18 : f32 to vector<16x128xf32>
    %33 = arith.mulf %32, %31 : vector<16x128xf32>
    %cst_19 = arith.constant -1.000000e+01 : f32
    %34 = vector.broadcast %cst_19 : f32 to vector<16x128xf32>
    %35 = arith.addf %34, %33 : vector<16x128xf32>
    %36 = math.exp %35 : vector<16x128xf32>
    %37 = arith.select %28, %36, %22 : vector<16x128xi1>, vector<16x128xf32>
    %c0_20 = arith.constant 0 : index
    %c0_21 = arith.constant 0 : index
    %38 = vector.load %arg8[%c0_20, %c0_21] : memref<16x128xf32, #tpu.memory_space<vmem>>, vector<16x128xf32>
    tpu.vector_store %arg8[%c0_20, %c0_21], %37 {strides = array<i32>} : memref<16x128xf32, #tpu.memory_space<vmem>>, vector<16x128xf32>,
    return
  }
  func.func @transform_0(%arg0: i32) -> (i32, i32) {
    %c0_i32 = arith.constant 0 : i32
    %c0_i32_0 = arith.constant 0 : i32
    return %arg0, %c0_i32 : i32, i32
  }
  func.func @transform_1(%arg0: i32) -> (i32, i32) {
    %c0_i32 = arith.constant 0 : i32
    %c0_i32_0 = arith.constant 0 : i32
    %c0_i32_1 = arith.constant 0 : i32
    return %c0_i32, %c0_i32_0 : i32, i32
  }
  func.func @transform_2(%arg0: i32) -> (i32, i32) {
    %c0_i32 = arith.constant 0 : i32
    %c0_i32_0 = arith.constant 0 : i32
    %c0_i32_1 = arith.constant 0 : i32
    return %c0_i32, %c0_i32_0 : i32, i32
  }
  func.func @transform_3(%arg0: i32) -> (i32, i32) {
    %c0_i32 = arith.constant 0 : i32
    %c0_i32_0 = arith.constant 0 : i32
    %c0_i32_1 = arith.constant 0 : i32
    return %c0_i32, %c0_i32_0 : i32, i32
  }
  func.func @transform_4(%arg0: i32) -> (i32, i32) {
    %c0_i32 = arith.constant 0 : i32
    %c0_i32_0 = arith.constant 0 : i32
    %c0_i32_1 = arith.constant 0 : i32
    return %c0_i32, %c0_i32_0 : i32, i32
  }
  func.func @transform_5(%arg0: i32) -> (i32, i32) {
    %c0_i32 = arith.constant 0 : i32
    %c0_i32_0 = arith.constant 0 : i32
    %c0_i32_1 = arith.constant 0 : i32
    return %c0_i32, %c0_i32_0 : i32, i32
  }
  func.func @transform_6(%arg0: i32) -> (i32, i32) {
    %c0_i32 = arith.constant 0 : i32
    %c0_i32_0 = arith.constant 0 : i32
    %c0_i32_1 = arith.constant 0 : i32
    return %c0_i32, %c0_i32_0 : i32, i32
  }
  func.func @transform_7(%arg0: i32) -> (i32, i32) {
    %c0_i32 = arith.constant 0 : i32
    %c0_i32_0 = arith.constant 0 : i32
    return %arg0, %c0_i32 : i32, i32
  }
}

</mosaic_0001>

<bundles_post_ra>
// kernel: tpu_custom_call.1
= control target key start
LH: loop header
LB: loop body
LE: loop exit
PB: predicated region body
PF: predicated region fallthrough
CT: control target
= control target key end

     0   :  { %12 = vsyncpa [#allocation3], 0  ;;  %s1088_s0 = inlined_call_operand.vmem [shape: f32[20,128], index: 0, kind: input, shape index: {}]   ;;  %s1089_s1 = inlined_call_operand.vmem [shape: bf16[128,32], index: 1, kind: input, shape index: {}]   ;;  %s1090_s2 = inlined_call_operand.vmem [shape: f32[1,32], index: 2, kind: input, shape index: {}]   ;;  %s1091_s3 = inlined_call_operand.vmem [shape: bf16[32,32], index: 3, kind: input, shape index: {}]   ;;  %s1092_s4 = inlined_call_operand.vmem [shape: f32[1,32], index: 4, kind: input, shape index: {}]   ;;  %s1093_s5 = inlined_call_operand.vmem [shape: bf16[32,128], index: 5, kind: input, shape index: {}]   ;;  %s1094_s6 = inlined_call_operand.vmem [shape: f32[1,128], index: 6, kind: input, shape index: {}]   ;;  %s1095_s7 = inlined_call_operand.hbm [shape: f32[20,128], index: 7, kind: output, shape index: {}]  }
   0x1   :  { %14 = vsyncpa [#allocation3 + $0x1], 0  ;;  %s918_s24 = smov 0   ;;  %s920_s25 = smov 0  }
   0x2   :  { %s922_s26 = smov 0   ;;  %s924_s27 = smov 0  }
   0x3 LB: > { %s939_s28 = sadd.s32 4294967295, %s871_s27   ;;  %s664_s29 = sadd.s32 4294967294, %s871_s27   ;;  %s871_s27 = sphi %s924_s27, %s1101_s27   ;;  %s867_s26 = sphi %s922_s26, %s1100_s26   ;;  %s863_s25 = sphi %s920_s25, %s1099_s25   ;;  %s859_s24 = sphi %s918_s24, %s1098_s24  }
   0x4   : > { %s943_s30 = sadd.s32 1, %s871_s27   ;;  %s179_s8 = sadd.s32 1, %s867_s26 }
   0x5   : > { %s176_s9 = ssub.s32 %s871_s27, %s943_s30  ;;  %p189_p0 = scmp.ne.s32.totalorder %s867_s26, %s863_s25 }
   0x6   : > { %p177_p1 = scmp.eq.s32.totalorder %s176_s9, 0  ;;  %p190_p2 = scmp.eq.s32.totalorder %s939_s28, 1 }
   0x7   : > { %p195_p3 = scmp.ne.s32.totalorder %s863_s25, %s859_s24  ;;  %p196_p4 = scmp.eq.s32.totalorder %s664_s29, 1 }
   0x8   : > { %s954_s10 = scalar_select %p177_p1, %s867_s26, %s179_s8  }
   0x9   : > { %p956_p5 = por %p190_p2, %p189_p0  ;;  %p960_p6 = por %p196_p4, %p195_p3 }
   0xa   : > { %p667_p7 = scmp.ge.s32.totalorder %s871_s27, 1  ;;  %p249_p8 = scmp.lt.s32.totalorder %s871_s27, 3 }
   0xc   : > { %p250_p9 = pnand %p667_p7, %p249_p8 }
   0xd   : > { %s981_s21 = sshll.u32 (!%p250_p9), %s939_s28, 1  ;;  %s282_s20 = sand.u32 (!%p250_p9), 1, %s863_s25  }
   0xe   : > { %253 = sbr.rel (%p250_p9) target bundleno = 722 (0x2d2), region = 48  ;;  %p290_p10 = scmp.lt.s32.totalorder (!%p250_p9), %s981_s21, 2 }
   0xf   : > { %s1029_s9 = scalar_lea.sflag (!%p250_p9), [#allocation3], %s282_s20 }
  0x13   : > { %v791_v0 = vld [vmem:[%s1089_s1 + $0x38] sm:$0xff]   ;;  %v873_v1 = vmov 0.0   ;;  %v792_v2 = vld [vmem:[%s1089_s1 + $0x30] sm:$0xff]   ;;  %vm874_vm0 = vmmov 0   ;;  %v793_v3 = vld [vmem:[%s1089_s1 + $0x28] sm:$0xff]   ;;  %s291_s29 = scalar_select %p290_p10, %s981_s21, 2  ;;  %v561_v51 = vlaneseq }
  0x14   : > { %713 = vmatprep.subr.bf16.mxu0 %v873_v1  ;;  %733 = vmatprep.subr.bf16.mxu1 %v873_v1  ;;  %v794_v4 = vld [vmem:[%s1089_s1 + $0x20] sm:$0xff]   ;;  %v795_v5 = vld [vmem:[%s1089_s1 + $0x18] sm:$0xff]   ;;  %v796_v6 = vld [vmem:[%s1089_s1 + $0x10] sm:$0xff]   ;;  %vm446_vm1 = vcmask 261120  }
  0x15   : > { %714 = vmatpush3.bf16.msra.mxu0 %v791_v0  ;;  %729 = vmatprep.mubr.msk.bf16.mxu0 %vm874_vm0, %v873_v1  ;;  %s670_s13 = sshll.u32 %s291_s29, 3  ;;  %v797_v7 = vld [vmem:[%s1089_s1 + $0x8] sm:$0xff]   ;;  %v798_v8 = vld [vmem:[%s1089_s1] sm:$0xff]   ;;  %v562_v54 = vand.u32 127, %v561_v51  ;;  %s668_s29 = sshll.u32 %s282_s20, 4 }
  0x16   : > { %715 = vmatprep.subr.bf16.mxu0 %v873_v1  ;;  %737 = vmatprep.mubr.msk.bf16.mxu1 %vm874_vm0, %v873_v1  ;;  %s293_s18 = scalar_lea.vmem %s1088_s0, %s670_s13  ;;  %v799_v12 = vld [vmem:[%s1091_s3 + $0x8] sm:$0xff]   ;;  %v800_v13 = vld [vmem:[%s1091_s3] sm:$0xff]   ;;  %s284_s8 = scalar_lea.vmem [#allocation2], %s668_s29 }
  0x17   : > { %v305_v9 = vld [vmem:[%s293_s18] sm:$0xff]  ;;  %v306_v10 = vld [vmem:[%s293_s18 + $0x8] sm:$0xff]  ;;  %734 = vmatpush3.bf16.msra.mxu1 %v799_v12  ;;  %vm563_vm2 = vcmp.ge.s32.totalorder %v562_v54, 4  ;;  %vm564_vm3 = vcmp.lt.s32.totalorder %v562_v54, 8  ;;  %s591_s13 = ssub.s32 (%p956_p5), 3, %s981_s21 }
  0x18   : > { %v307_v11 = vpack.c.bf16 %v306_v10, %v305_v9  ;;  %735 = vmatprep.subr.bf16.mxu1 %v873_v1  ;;  %v671_v14 = vld [vmem:[%s1090_s2] ss:$0 sm:$0xff]  ;;  %v801_v24 = vld [vmem:[%s1093_s5 + $0x8] sm:$0xff]   ;;  %vm565_vm4 = vmand %vm563_vm2, %vm564_vm3  ;;  %p592_p11 = scmp.lt.s32.totalorder (%p956_p5), %s591_s13, 2 }
  0x19   : > { %716 = vmatpush3.bf16.msra.mxu0 %v792_v2  ;;  %v802_v25 = vld [vmem:[%s1093_s5] sm:$0xff]  }
  0x1a   : > { %717 = vmatprep.subr.bf16.mxu0 %v873_v1  ;;  %v680_v26 = vld [vmem:[%s1092_s4] ss:$0 sm:$0xff] }
  0x1b   : > { %736 = vmatpush3.bf16.msra.mxu1 %v800_v13  ;;  %v684_v36 = vld [vmem:[%s1094_s6] ss:$0 sm:$0xff] }
  0x1c   : > { %741 = vmatprep.subr.bf16.mxu1 %v873_v1 }
  0x1d   : > { %718 = vmatpush3.bf16.msra.mxu0 %v793_v3 }
  0x1e   : > { %719 = vmatprep.subr.bf16.mxu0 %v873_v1 }
  0x21   : > { %720 = vmatpush3.bf16.msra.mxu0 %v794_v4 }
  0x22   : > { %721 = vmatprep.subr.bf16.mxu0 %v873_v1 }
  0x25   : > { %722 = vmatpush3.bf16.msra.mxu0 %v795_v5 }
  0x26   : > { %723 = vmatprep.subr.bf16.mxu0 %v873_v1 }
  0x29   : > { %724 = vmatpush3.bf16.msra.mxu0 %v796_v6 }
  0x2a   : > { %725 = vmatprep.subr.bf16.mxu0 %v873_v1 }
  0x2d   : > { %726 = vmatpush3.bf16.msra.mxu0 %v797_v7 }
  0x2e   : > { %727 = vmatprep.subr.bf16.mxu0 %v873_v1 }
  0x31   : > { %728 = vmatpush3.bf16.msra.mxu0 %v798_v8 }
  0x34   : > { %730 = vmatmul.mubr.bf16.vlgmr.msra.gmra.mxu0 %v307_v11 }
  0xf4   : > { %v413_v15 = vpop.f32.mrf.mxu0 }
  0xf5   : > { %v414_v17 = vadd.f32 %v671_v14, %v413_v15 }
  0xf6   : > { %v731_v16 = vpop.f32.mrf.mxu0 }
  0xf7   : > { %v420_v21 = vmax.f32 %v414_v17, 0.0 }
  0xf8   : > { %v416_v18 = vpop.f32.mrf.mxu0 }
  0xf9   : > { %v417_v19 = vadd.f32 %v671_v14, %v416_v18 }
  0xfa   : > { %v732_v20 = vpop.f32.mrf.mxu0 }
  0xfb   : > { %v421_v22 = vmax.f32 %v417_v19, 0.0 }
  0xfd   : > { %v422_v23 = vpack.c.bf16 %v421_v22, %v420_v21 }
  0xff   : > { %738 = vmatmul.mubr.msk.bf16.vlgmr.msra.gmra.mxu1 %vm446_vm1, %v422_v23 }
 0x100   : > { %745 = vmatprep.mubr.msk.bf16.mxu1 %vm874_vm0, %v873_v1  ;;  %742 = vmatpush3.bf16.msra.mxu1 %v801_v24 }
 0x101   : > { %743 = vmatprep.subr.bf16.mxu1 %v873_v1 }
 0x104   : > { %744 = vmatpush3.bf16.msra.mxu1 %v802_v25 }
 0x1bf   : > { %v484_v27 = vpop.f32.mrf.mxu1 }
 0x1c0   : > { %v485_v29 = vadd.f32 %v680_v26, %v484_v27 }
 0x1c1   : > { %v739_v28 = vpop.f32.mrf.mxu1 }
 0x1c2   : > { %v491_v33 = vmax.f32 %v485_v29, 0.0 }
 0x1c3   : > { %v487_v30 = vpop.f32.mrf.mxu1 }
 0x1c4   : > { %v488_v31 = vadd.f32 %v680_v26, %v487_v30 }
 0x1c5   : > { %v740_v32 = vpop.f32.mrf.mxu1 }
 0x1c6   : > { %v492_v34 = vmax.f32 %v488_v31, 0.0 }
 0x1c8   : > { %v493_v35 = vpack.c.bf16 %v492_v34, %v491_v33 }
 0x1ca   : > { %746 = vmatmul.mubr.msk.bf16.vlgmr.msra.gmra.mxu1 %vm446_vm1, %v493_v35 }
 0x28a   : > { %v554_v37 = vpop.f32.mrf.mxu1 }
 0x28b   : > { %v555_v38 = vadd.f32 %v684_v36, %v554_v37 }
 0x28c   : > { %v747_v39 = vpop.f32.mrf.mxu1 }
 0x28d   : > { %803 = vtanh.f32 %v555_v38 }
 0x28e   : > { %v557_v40 = vpop.f32.mrf.mxu1 }
 0x28f   : > { %v558_v41 = vadd.f32 %v684_v36, %v557_v40 }
 0x290   : > { %v748_v42 = vpop.f32.mrf.mxu1 }
 0x291   : > { %805 = vtanh.f32 %v558_v41 }
 0x29a   : > { %v804_v43 = vpop.eup %803 }
 0x29b   : > { %v568_v44 = vadd.f32 1.0, %v804_v43 }
 0x29d   : > { %v570_v45 = vmul.f32 6.0, %v568_v44 }
 0x29e   : > { %v806_v46 = vpop.eup %805 }
 0x29f   : > { %v572_v47 = vadd.f32 -10.0, %v570_v45  ;;  %v569_v48 = vadd.f32 1.0, %v806_v46 }
 0x2a1   : > { %v574_v49 = vmul.f32 1.442695, %v572_v47  ;;  %v571_v50 = vmul.f32 6.0, %v569_v48 }
 0x2a3   : > { %807 = vpow2.f32 %v574_v49  ;;  %v573_v52 = vadd.f32 -10.0, %v571_v50 }
 0x2a5   : > { %v576_v53 = vmul.f32 1.442695, %v573_v52 }
 0x2a7   : > { %809 = vpow2.f32 %v576_v53 }
 0x2b0   : > { %v808_v55 = vpop.eup %807 }
 0x2b1   : > { %v578_v56 = vsel %vm565_vm4, %v808_v55, %v555_v38 }
 0x2b2   : > { %580 = vst [vmem:[%s284_s8] sm:$0xff] %v578_v56  ;;  %589 = sbr.rel (!%p956_p5) target bundleno = 722 (0x2d2), region = 52 }
 0x2b4   : > { %v810_v57 = vpop.eup %809 }
 0x2b5   : > { %v579_v58 = vsel %vm565_vm4, %v810_v57, %v558_v41 }
 0x2b6   : > { %581 = vst [vmem:[%s284_s8 + $0x8] sm:$0xff] %v579_v58 }
 0x2b7   : > { %s1103_s13 = smov (!%p592_p11, %s591_s13), 2 }
 0x2b8   : > { %s1034_s14 = sshll.u32 %s1103_s13, 7 }
 0x2b9   : > { %s596_s15 = ssub.s32 256, %s1034_s14 }
 0x2ba   : > { %597 = vsyncadd %s1029_s9, %s596_s15  ;;  %p691_p12 = scmp.ne.s32.totalorder %s1034_s14, 0  ;;  %s697_s16 = sshll.u32 %s939_s28, 8 }
 0x2bb   : > { %s1043_s11 = scalar_lea.hbm %s1095_s7, %s697_s16  ;;  %s602_s19 = sshll.u32 %s284_s8, 4  ;;  %s1045_s19 = int_to_ptr.vmem [resolvable:$true] %s602_s19 }
 0x2bc   : > { %s811_s21 = scalar_lea.vmem %s1045_s19, %s1034_s14  ;;  %s875_s20 = smov [#allocation2]  }
 0x2bd   : > { %p812_p13 = scmp.ne.s32.totalorder %s1045_s19, %s811_s21  ;;  %s815_s22 = sshll.u32 %s875_s20, 4  ;;  %s816_s22 = int_to_ptr.vmem [resolvable:$false] %s815_s22 }
 0x2be   : > { %s817_s28 = scalar_lea.vmem %s816_s22, 512  ;;  %p818_p2 = scmp.lt.s32.totalorder %s1045_s19, %s816_s22 }
 0x2bf   : > { %p813_p0 = pnand %p812_p13, %p691_p12  ;;  %p819_p3 = scmp.lt.s32.totalorder %s817_s28, %s811_s21 }
 0x2c1   : > { %p814_p1 = pneg %p813_p0  ;;  %p820_p4 = por %p819_p3, %p818_p2 }
 0x2c3   : > { %p821_p5 = pnand %p820_p4, %p814_p1 }
 0x2c5   : > { %824 = shalt.err (!%p821_p5)
}
 0x2c6   : > { %s825_s23 = scalar_lea.hbm %s1043_s11, %s1034_s14  ;;  %s829_s13 = scalar_lea.hbm %s1095_s7, 384 }
 0x2c7   : > { %p826_p7 = scmp.ne.s32.totalorder %s1043_s11, %s825_s23  ;;  %p830_p10 = scmp.lt.s32.totalorder %s1043_s11, %s1095_s7 }
 0x2c8   : > { %p831_p11 = scmp.lt.s32.totalorder %s829_s13, %s825_s23 }
 0x2c9   : > { %p827_p8 = pnand %p826_p7, %p691_p12 }
 0x2ca   : > { %p832_p13 = por %p831_p11, %p830_p10 }
 0x2cb   : > { %p828_p9 = pneg %p827_p8 }
 0x2cd   : > { %p833_p0 = pnand %p832_p13, %p828_p9 }
 0x2cf   : > { %836 = shalt.err (!%p833_p0)
}
 0x2d0   : > { %s876_s17 = smov 128   ;;  %s877_s18 = smov 8  }
 0x2d1   : > { %608 = dma.vmem_to_hbm [thread:$0]  (%p691_p12), %s1045_s19, %s1034_s14, %s1043_s11, %s1029_s9, %s876_s17, %s876_s17, %s877_s18  }
 0x2d2 PF: > { %p754_p1 = scmp.ge.s32.totalorder %s871_s27, 2  ;;  %s617_s21 = sand.u32 1, %s859_s24  }
 0x2d3   : > { %s618_s20 = scalar_lea.sflag [#allocation3], %s617_s21 }
 0x2d4   : > { %p751_p2 = pnand %p754_p1, %p960_p6 }
 0x2d6   : > { %p752_p3 = pneg %p751_p2 }
 0x2d8   : > { %854 = dma.done.wait (%p752_p3), %s618_s20, 256  }
 0x2d9   : > { %856 = vsyncadd (%p752_p3), %s618_s20, 4294967040  ;;  %p17_p4 = scmp.ge.s32.totalorder %s943_s30, 4   ;;  %s1098_s24 = smov %s863_s25 }
 0x2da   : > { %s1099_s25 = smov %s867_s26  ;;  %s1100_s26 = smov %s954_s10 }
 0x2db   : > { %s1101_s27 = smov %s943_s30  ;;  %19 = sbr.rel (!%p17_p4) target bundleno = 3 (0x3), region = 83 }
 0x2e0   :  { %623 = vsyncpa [#allocation3], 1 }
 0x2e1   :  { %625 = vsyncpa [#allocation3 + $0x1], 1 }

</bundles_post_ra>
